<compile_context>
chip_gen: v7x
topology: tpu7x:2x2x1
jax: 0.10.0
libtpu: 0.0.40
codegen_flags: <defaults>
</compile_context>

<pallas_src>
import functools

import jax
import jax.numpy as jnp
from jax.experimental import pallas as pl
from jax.experimental.pallas import tpu as pltpu

_MIB = 1024 * 1024


def _vmem_budgets():
    """Per-generation (logits-tile byte budget, scoped VMEM limit)."""
    vmem = 64 * _MIB                          # conservative fallback = v7x per-TC VMEM
    try:
        info = pltpu.get_tpu_info()
        vmem = int(getattr(info, "vmem_capacity_bytes", vmem)) or vmem
    except Exception:
        pass                                  # no TPU visible at trace time: stay conservative
    # One logits buffer (double-buffered by the pipeline); leave headroom for the targets
    # block, outputs/accumulator and compiler scratch.
    tile_bytes = int(min(16 * _MIB, vmem // 6))        # ~16 MiB (v5e/v6e), ~10 MiB (v7x)
    vmem_limit = int(min(64 * _MIB, max(32 * _MIB, vmem // 2)))
    return tile_bytes, vmem_limit


def _pick_tile_n(n, c, itemsize, tile_bytes):
    """Largest batch tile (rows) that fits the byte budget, sized on the lane-padded
    footprint and rounded to the dtype's sublane packing (no artificial row cap)."""
    sub = 8 * max(1, 4 // max(1, itemsize))            # f32 -> 8, bf16 -> 16, int8 -> 32
    lanes = ((c + 127) // 128) * 128                   # C is lane-padded to 128 in VMEM
    row_bytes = max(1, lanes * itemsize)
    rows = tile_bytes // row_bytes
    if rows >= 128:
        rows -= rows % 128                             # keep DMAs / stores 128-aligned
    else:
        rows = max(sub, rows)
        rows -= rows % sub
    rows = max(int(rows), sub)
    if n <= rows:
        return int(n)                                  # single block covers the whole batch
    return int(rows)


def _per_sample_loss(logits, targets, *, alpha, m_in, m_out):
    """(tn, C) logits + (tn, 1) int32 targets -> (tn, 1) f32 per-sample loss."""
    logits = logits.astype(jnp.float32)
    tn, c = logits.shape

    # Stable logsumexp over the class (lane) axis.
    row_max = jnp.max(logits, axis=1, keepdims=True)                     # (tn, 1)
    sum_exp = jnp.sum(jnp.exp(logits - row_max), axis=1, keepdims=True)  # (tn, 1)
    lse = row_max + jnp.log(sum_exp)                                     # (tn, 1)
    energy = -lse

    known = targets >= 0                                                 # (tn, 1)

    # Per-sample cross-entropy; OOD samples (targets < 0) contribute 0.
    col = jax.lax.broadcasted_iota(jnp.int32, (tn, c), 1)
    safe_t = jnp.where(known, targets, 0)
    correct = jnp.sum(jnp.where(col == safe_t, logits, 0.0),
                      axis=1, keepdims=True)                             # (tn, 1)
    nll = jnp.where(known, lse - correct, 0.0)

    # Energy regularization term.
    reg = jnp.where(
        known,
        jnp.square(jnp.maximum(energy - m_in, 0.0)),
        jnp.square(jnp.maximum(m_out - energy, 0.0)),
    )
    return nll + alpha * reg


def _per_sample_kernel(logits_ref, targets_ref, out_ref, *, alpha, m_in, m_out):
    out_ref[...] = _per_sample_loss(
        logits_ref[...], targets_ref[...], alpha=alpha, m_in=m_in, m_out=m_out)


def _reduce_kernel(logits_ref, targets_ref, out_ref, *, alpha, m_in, m_out,
                   n_actual, tile_n):
    # Grid is (splits, steps): axis 0 = per-core partition ("parallel"),
    # axis 1 = blocks handled by this core ("arbitrary", accumulator resident).
    i = pl.program_id(1)
    blk = pl.program_id(0) * pl.num_programs(1) + i        # logical block index

    loss = _per_sample_loss(
        logits_ref[...], targets_ref[...], alpha=alpha, m_in=m_in, m_out=m_out)

    # Rows of a partial/overflow block read past the end of logits (unspecified VMEM
    # padding) and may produce NaN/Inf in `loss`; the select below (not arithmetic
    # masking) guarantees those rows contribute exactly 0.  Keep it a jnp.where.
    row = blk * tile_n + jax.lax.broadcasted_iota(jnp.int32, loss.shape, 0)
    partial = jnp.sum(jnp.where(row < n_actual, loss, 0.0))

    @pl.when(i == 0)
    def _():
        out_ref[...] = jnp.zeros_like(out_ref)

    # (1, 8, 128) per-core accumulator tile; every element carries the same running sum
    # (the wrapper reads element [core, 0, 0]).  Keeps the output BlockSpec (8,128)-aligned.
    out_ref[...] += partial


def energy_regularized_loss(logits, targets, *, alpha=1.0, margin_in=-1.0,
                            margin_out=-1.0, reduction="mean", tile_n=None):
    """JAX/Pallas equivalent of EnergyRegularizedLoss.forward (2-D logits branch)."""
    if logits.ndim != 2:
        # TODO(synk): 4-D (NCHW) dense-prediction branch not implemented.
        raise NotImplementedError("only the 2-D logits branch is implemented")

    n, c = logits.shape
    t2d = targets.astype(jnp.int32).reshape(n, 1)
    itemsize = jnp.dtype(logits.dtype).itemsize

    tile_bytes, vmem_limit = _vmem_budgets()
    if tile_n is None:
        tile_n = _pick_tile_n(n, c, itemsize, tile_bytes)
    total_blocks = pl.cdiv(n, tile_n)

    cost = pl.CostEstimate(
        flops=6 * n * c,
        transcendentals=n * (c + 1),
        bytes_accessed=n * c * itemsize + n * 4 + (n * 4 if reduction == "none" else 4),
    )

    if reduction in ("mean", "sum"):
        # Two-way split of the block range so v7x's second TensorCore gets half the work;
        # on 1-TC chips the outer axis just runs serially (negligible overhead).
        splits = 2 if total_blocks >= 2 else 1
        steps = pl.cdiv(total_blocks, splits)
        last_blk = total_blocks - 1

        def _blk(core, i):
            # Clamp overflow block indices (splits*steps may exceed total_blocks); the
            # kernel masks those rows out via the logical (unclamped) row index.
            return jnp.minimum(core * steps + i, last_blk)

        kernel = functools.partial(
            _reduce_kernel, alpha=float(alpha), m_in=float(margin_in),
            m_out=float(margin_out), n_actual=n, tile_n=tile_n)

        partials = pl.pallas_call(
            kernel,
            out_shape=jax.ShapeDtypeStruct((splits, 8, 128), jnp.float32),
            grid=(splits, steps),
            in_specs=[
                pl.BlockSpec((tile_n, c), lambda core, i: (_blk(core, i), 0)),
                pl.BlockSpec((tile_n, 1), lambda core, i: (_blk(core, i), 0)),
            ],
            out_specs=pl.BlockSpec((1, 8, 128), lambda core, i: (core, 0, 0)),
            compiler_params=pltpu.CompilerParams(
                dimension_semantics=("parallel", "arbitrary"),
                vmem_limit_bytes=vmem_limit),
            cost_estimate=cost,
        )(logits, t2d)

        total = jnp.sum(partials[:, 0, 0])
        if reduction == "mean":
            # Matches "reduction='none' then torch.mean": divides by ALL samples
            # (including OOD rows whose NLL is zero), as the module's apply_reduction does.
            return total / jnp.float32(n)
        return total

    if reduction != "none":
        raise ValueError(f"unknown reduction: {reduction!r}")

    kernel = functools.partial(
        _per_sample_kernel, alpha=float(alpha), m_in=float(margin_in),
        m_out=float(margin_out))
    per_sample = pl.pallas_call(
        kernel,
        out_shape=jax.ShapeDtypeStruct((n, 1), jnp.float32),
        grid=(total_blocks,),
        in_specs=[
            pl.BlockSpec((tile_n, c), lambda i: (i, 0)),
            pl.BlockSpec((tile_n, 1), lambda i: (i, 0)),
        ],
        out_specs=pl.BlockSpec((tile_n, 1), lambda i: (i, 0)),
        compiler_params=pltpu.CompilerParams(
            dimension_semantics=("parallel",),
            vmem_limit_bytes=vmem_limit),
        cost_estimate=cost,
    )(logits, t2d)
    return per_sample[:, 0]


def _reference(logits, targets, alpha, m_in, m_out, reduction):
    """Pure-JAX reference mirroring the PyTorch module (2-D logits branch)."""
    logits = logits.astype(jnp.float32)
    lse = jax.scipy.special.logsumexp(logits, axis=1)
    energy = -lse
    known = targets >= 0
    safe_t = jnp.where(known, targets, 0)
    correct = jnp.take_along_axis(logits, safe_t[:, None], axis=1)[:, 0]
    nll = jnp.where(known, lse - correct, 0.0)
    reg = jnp.where(
        known,
        jnp.square(jnp.maximum(energy - m_in, 0.0)),
        jnp.square(jnp.maximum(m_out - energy, 0.0)),
    )
    loss = nll + alpha * reg
    if reduction == "mean":
        return jnp.mean(loss)
    if reduction == "sum":
        return jnp.sum(loss)
    return loss


if __name__ == "__main__":
    key = jax.random.PRNGKey(0)
    k1, k2, k3, k4 = jax.random.split(key, 4)

    alpha, m_in, m_out = 1.0, -1.0, -1.0

    # --- Test 1: small f32 batch, all reductions -----------------------------
    N, C = 8, 32
    logits = jax.random.normal(k1, (N, C), dtype=jnp.float32) * 2.0
    targets = jnp.array([3, -1, 0, 5, -1, 2, 7, 1], dtype=jnp.int32)
    for red in ("none", "sum", "mean"):
        out = jax.block_until_ready(energy_regularized_loss(
            logits, targets, alpha=alpha, margin_in=m_in, margin_out=m_out,
            reduction=red))
        ref = jax.block_until_ready(
            _reference(logits, targets, alpha, m_in, m_out, red))
        assert jnp.allclose(out, ref, rtol=1e-5, atol=1e-5), (red, out, ref)

    # --- Test 2: multi-tile grid, partial last block, megacore reduce split ---
    N2, C2 = 20, 32
    logits2 = jax.random.normal(k2, (N2, C2), dtype=jnp.float32) * 2.0
    targets2 = (jax.random.randint(k3, (N2,), -1, C2)).astype(jnp.int32)
    for red in ("none", "mean", "sum"):
        out = jax.block_until_ready(energy_regularized_loss(
            logits2, targets2, alpha=alpha, margin_in=m_in, margin_out=m_out,
            reduction=red, tile_n=8))
        ref = jax.block_until_ready(
            _reference(logits2, targets2, alpha, m_in, m_out, red))
        assert jnp.allclose(out, ref, rtol=1e-5, atol=1e-5), (red, out, ref)

    # --- Test 3: bf16 logits stay bf16 across the HBM boundary ---------------
    N3, C3 = 16, 32
    logits3 = (jax.random.normal(k4, (N3, C3), dtype=jnp.float32) * 2.0
               ).astype(jnp.bfloat16)
    targets3 = jnp.array([0, 5, -1, 2, 9, -1, 1, 3, -1, 4, 6, 7, -1, 8, 2, 0],
                         dtype=jnp.int32)
    out = jax.block_until_ready(energy_regularized_loss(
        logits3, targets3, alpha=alpha, margin_in=m_in, margin_out=m_out,
        reduction="mean"))
    ref = jax.block_until_ready(
        _reference(logits3, targets3, alpha, m_in, m_out, "mean"))
    assert jnp.allclose(out, ref, rtol=1e-4, atol=1e-4), (out, ref)

    print("KERNEL_OK")
</pallas_src>

<mosaic_0001>
module attributes {stable_mosaic.version = 11 : i64} {
  func.func @_per_sample_kernel(%arg0: i32, %arg1: memref<8x32xf32, #tpu.memory_space<vmem>>, %arg2: memref<8x1xi32, #tpu.memory_space<vmem>>, %arg3: memref<8x1xf32, #tpu.memory_space<vmem>>) attributes {dimension_semantics = [#tpu.dimension_semantics<parallel>], iteration_bounds = array<i64: 1>, scalar_prefetch = 0 : i64, scratch_operands = 0 : i64, tpu.core_type = #tpu.core_type<tc>, window_params = [{transform_indices = @transform_0, window_bounds = array<i64: 8, 32>}, {transform_indices = @transform_1, window_bounds = array<i64: 8, 1>}, {transform_indices = @transform_2, window_bounds = array<i64: 8, 1>}]} {
    %c0 = arith.constant 0 : index
    %c0_0 = arith.constant 0 : index
    %0 = vector.load %arg1[%c0, %c0_0] : memref<8x32xf32, #tpu.memory_space<vmem>>, vector<8x32xf32>
    %c0_1 = arith.constant 0 : index
    %c0_2 = arith.constant 0 : index
    %1 = vector.load %arg2[%c0_1, %c0_2] : memref<8x1xi32, #tpu.memory_space<vmem>>, vector<8x1xi32>
    %cst = arith.constant dense<0xFF800000> : vector<8xf32>
    %2 = vector.multi_reduction <maximumf>, %0, %cst [1] : vector<8x32xf32> to vector<8xf32>
    %3 = vector.shape_cast %2 : vector<8xf32> to vector<8x1xf32>
    %4 = vector.broadcast %3 : vector<8x1xf32> to vector<8x32xf32>
    %5 = arith.subf %0, %4 : vector<8x32xf32>
    %6 = math.exp %5 : vector<8x32xf32>
    %cst_3 = arith.constant dense<0.000000e+00> : vector<8xf32>
    %7 = vector.multi_reduction <add>, %6, %cst_3 [1] : vector<8x32xf32> to vector<8xf32>
    %8 = vector.shape_cast %7 : vector<8xf32> to vector<8x1xf32>
    %9 = math.log %8 : vector<8x1xf32>
    %10 = arith.addf %3, %9 : vector<8x1xf32>
    %cst_4 = arith.constant 0.000000e+00 : f32
    %11 = vector.broadcast %cst_4 : f32 to vector<8x1xf32>
    %12 = arith.subf %11, %10 : vector<8x1xf32>
    %c0_i32 = arith.constant 0 : i32
    %13 = vector.broadcast %c0_i32 : i32 to vector<8x1xi32>
    %14 = arith.cmpi sge, %1, %13 : vector<8x1xi32>
    %15 = tpu.iota {dimensions = array<i32: 1>} : vector<8x32xi32>
    %c0_i32_5 = arith.constant 0 : i32
    %16 = vector.broadcast %c0_i32_5 : i32 to vector<8x1xi32>
    %17 = arith.select %14, %1, %16 : vector<8x1xi1>, vector<8x1xi32>
    %18 = vector.broadcast %17 : vector<8x1xi32> to vector<8x32xi32>
    %19 = arith.cmpi eq, %15, %18 : vector<8x32xi32>
    %cst_6 = arith.constant 0.000000e+00 : f32
    %20 = vector.broadcast %cst_6 : f32 to vector<8x32xf32>
    %21 = arith.select %19, %0, %20 : vector<8x32xi1>, vector<8x32xf32>
    %cst_7 = arith.constant dense<0.000000e+00> : vector<8xf32>
    %22 = vector.multi_reduction <add>, %21, %cst_7 [1] : vector<8x32xf32> to vector<8xf32>
    %23 = vector.shape_cast %22 : vector<8xf32> to vector<8x1xf32>
    %24 = arith.subf %10, %23 : vector<8x1xf32>
    %cst_8 = arith.constant 0.000000e+00 : f32
    %25 = vector.broadcast %cst_8 : f32 to vector<8x1xf32>
    %26 = arith.select %14, %24, %25 : vector<8x1xi1>, vector<8x1xf32>
    %cst_9 = arith.constant -1.000000e+00 : f32
    %27 = vector.broadcast %cst_9 : f32 to vector<8x1xf32>
    %28 = arith.subf %12, %27 : vector<8x1xf32>
    %cst_10 = arith.constant 0.000000e+00 : f32
    %29 = vector.broadcast %cst_10 : f32 to vector<8x1xf32>
    %30 = arith.maximumf %28, %29 : vector<8x1xf32>
    %31 = arith.mulf %30, %30 : vector<8x1xf32>
    %cst_11 = arith.constant -1.000000e+00 : f32
    %32 = vector.broadcast %cst_11 : f32 to vector<8x1xf32>
    %33 = arith.subf %32, %12 : vector<8x1xf32>
    %cst_12 = arith.constant 0.000000e+00 : f32
    %34 = vector.broadcast %cst_12 : f32 to vector<8x1xf32>
    %35 = arith.maximumf %33, %34 : vector<8x1xf32>
    %36 = arith.mulf %35, %35 : vector<8x1xf32>
    %37 = arith.select %14, %31, %36 : vector<8x1xi1>, vector<8x1xf32>
    %cst_13 = arith.constant 1.000000e+00 : f32
    %38 = vector.broadcast %cst_13 : f32 to vector<8x1xf32>
    %39 = arith.mulf %38, %37 : vector<8x1xf32>
    %40 = arith.addf %26, %39 : vector<8x1xf32>
    %c0_14 = arith.constant 0 : index
    %c0_15 = arith.constant 0 : index
    %41 = vector.load %arg3[%c0_14, %c0_15] : memref<8x1xf32, #tpu.memory_space<vmem>>, vector<8x1xf32>
    tpu.vector_store %arg3[%c0_14, %c0_15], %40 {strides = array<i32>} : memref<8x1xf32, #tpu.memory_space<vmem>>, vector<8x1xf32>,
    return
  }
  func.func @transform_0(%arg0: i32) -> (i32, i32) {
    %c0_i32 = arith.constant 0 : i32
    %c0_i32_0 = arith.constant 0 : i32
    return %arg0, %c0_i32 : i32, i32
  }
  func.func @transform_1(%arg0: i32) -> (i32, i32) {
    %c0_i32 = arith.constant 0 : i32
    %c0_i32_0 = arith.constant 0 : i32
    return %arg0, %c0_i32 : i32, i32
  }
  func.func @transform_2(%arg0: i32) -> (i32, i32) {
    %c0_i32 = arith.constant 0 : i32
    %c0_i32_0 = arith.constant 0 : i32
    return %arg0, %c0_i32 : i32, i32
  }
}

</mosaic_0001>

<bundles_post_ra>
// kernel: tpu_custom_call.1
= control target key start
LH: loop header
LB: loop body
LE: loop exit
PB: predicated region body
PF: predicated region fallthrough
CT: control target
= control target key end

     0   :  { %vm13_vm0 = vcmask 261120   ;;  %v62_v1 = vmov 0   ;;  %v28_v8 = vlaneseq  ;;  %vm49_vm3 = vcmask 7168   ;;  %s93_s0 = inlined_call_operand.vmem [shape: f32[8,32], index: 0, kind: input, shape index: {}]   ;;  %s94_s1 = inlined_call_operand.vmem [shape: s32[8,1], index: 1, kind: input, shape index: {}]   ;;  %s95_s2 = inlined_call_operand.vmem [shape: f32[8,1], index: 2, kind: output, shape index: {}]  }
   0x1   :  { %v11_v0 = vld [vmem:[%s93_s0] sm:$0xff]  ;;  %57 = vset.pattern.permute.xlu0 %v62_v1 }
   0x2   :  { %v14_v2 = vsel %vm13_vm0, %v11_v0, -inf  ;;  %v12_v3 = vld [vmem:[%s94_s1] sm:$0xff]  ;;  %v29_v9 = vand.u32 127, %v28_v8 }
   0x3   :  { %15 = vmax.xlane.f32.xlu0 %v14_v2  ;;  %vm27_vm1 = vcmp.ge.s32.totalorder %v12_v3, 0 }
   0x4   :  { %v30_v4 = vsel %vm27_vm1, %v12_v3, 0 }
  0x19   :  { %32 = vperm.xlu0 %57, %v30_v4  }
  0x90   :  { %v16_v5 = vpop.xlane.xlu0 %15 }
  0x91   :  { %v17_v6 = vsub.f32 %v11_v0, %v16_v5 }
  0x93   :  { %v18_v7 = vmul.f32 1.442695, %v17_v6 }
  0x95   :  { %58 = vpow2.f32 %v18_v7 }
  0x98   :  { %v33_v10 = vpop.permute.xlu0 %32 }
  0x99   :  { %vm34_vm2 = vcmp.eq.s32.totalorder %v29_v9, %v33_v10 }
  0x9a   :  { %v35_v12 = vsel %vm34_vm2, %v11_v0, 0.0 }
  0x9b   :  { %v36_v14 = vsel %vm13_vm0, %v35_v12, 0.0 }
  0x9f   :  { %v59_v11 = vpop.eup %58 }
  0xa0   :  { %v20_v13 = vsel %vm13_vm0, %v59_v11, 0.0 }
  0xa1   :  { %21 = vadd.xlane.f32.xlu1 %v20_v13 }
  0xa5   :  { %37 = vadd.xlane.f32.xlu1 %v36_v14 }
 0x12e   :  { %v22_v15 = vpop.xlane.xlu1 %21 }
 0x12f   :  { %60 = vlog2.f32 %v22_v15 }
 0x132   :  { %v38_v20 = vpop.xlane.xlu1 %37 }
 0x139   :  { %v61_v16 = vpop.eup %60 }
 0x13a   :  { %v24_v17 = vmul.f32 0.6931472, %v61_v16 }
 0x13c   :  { %v25_v18 = vadd.f32 %v24_v17, %v16_v5 }
 0x13e   :  { %v26_v19 = vsub.f32 0.0, %v25_v18  ;;  %v39_v25 = vsub.f32 %v25_v18, %v38_v20 }
 0x140   :  { %v55_v21 = vadd.f32 1.0, %v26_v19  ;;  %v44_v22 = vsub.f32 -1.0, %v26_v19  ;;  %v40_v29 = vsel %vm27_vm1, %v39_v25, 0.0 }
 0x142   :  { %v42_v23 = vmax.f32 %v55_v21, 0.0  ;;  %v45_v24 = vmax.f32 %v44_v22, 0.0 }
 0x144   :  { %v43_v26 = vmul.f32 %v42_v23, %v42_v23  ;;  %v46_v27 = vmul.f32 %v45_v24, %v45_v24 }
 0x146   :  { %v47_v28 = vsel %vm27_vm1, %v43_v26, %v46_v27 }
 0x147   :  { %v48_v30 = vadd.f32 %v47_v28, %v40_v29 }
 0x149   :  { %50 = vst.msk [vmem:[%s95_s2] sm:$0xff] %vm49_vm3, %v48_v30 }

</bundles_post_ra>
